<compile_context>
chip_gen: v7x
topology: tpu7x:2x2x1
jax: 0.10.0
libtpu: 0.0.40
codegen_flags: <defaults>
</compile_context>

<pallas_src>
import functools

import jax
import jax.numpy as jnp
from jax.experimental import pallas as pl
from jax.experimental.pallas import tpu as pltpu

_NEG_BIG = -1e30  # finite "-inf" used for masked (out-of-vocab) columns


def _round_up(x, m):
    return ((x + m - 1) // m) * m


def _pred_layer_kernel(y_ref, x_ref, w_ref, b_ref, *rest,
                       tile_v, n_words, with_scores, masked_tail):
    """Grid = (token_tile i [parallel], vocab_tile j [arbitrary])."""
    if with_scores:
        scores_ref, loss_ref, m_scr, l_scr, p_scr = rest
    else:
        scores_ref = None
        loss_ref, m_scr, l_scr, p_scr = rest

    j = pl.program_id(1)

    @pl.when(j == 0)
    def _():
        m_scr[...] = jnp.full_like(m_scr, -jnp.inf)
        l_scr[...] = jnp.zeros_like(l_scr)
        p_scr[...] = jnp.zeros_like(p_scr)

    # (tile_n, dim) x (tile_v, dim) contraction on the MXU (native bf16 operands,
    # f32 accumulation) — no wrapper-side transpose of W needed.
    scores = jax.lax.dot_general(
        x_ref[...], w_ref[...],
        dimension_numbers=(((1,), (1,)), ((), ())),
        preferred_element_type=jnp.float32)
    scores = scores + b_ref[j]                      # resident bias row (1, tile_v), f32

    vocab_ids = jax.lax.broadcasted_iota(jnp.int32, scores.shape, 1) + j * tile_v
    if masked_tail:
        # Only traced when n_words % tile_v != 0: the last vocab tile reads an
        # out-of-bounds W block whose tail columns are undefined. Mask them
        # before the scores store AND the LSE max/sum.
        scores = jnp.where(vocab_ids < n_words, scores, _NEG_BIG)

    if with_scores:
        scores_ref[...] = scores.astype(scores_ref.dtype)

    # Online log-sum-exp accumulation across vocab tiles.
    m_prev = m_scr[...]                                           # (tile_n, 1)
    m_new = jnp.maximum(m_prev, jnp.max(scores, axis=-1, keepdims=True))
    alpha = jnp.exp(m_prev - m_new)
    l_scr[...] = alpha * l_scr[...] + jnp.sum(jnp.exp(scores - m_new),
                                              axis=-1, keepdims=True)
    m_scr[...] = m_new

    # Accumulate the target logit (only the vocab tile containing y contributes).
    y = y_ref[...]                                                # (tile_n, 1) int32
    p_scr[...] += jnp.sum(jnp.where(vocab_ids == y, scores, 0.0),
                          axis=-1, keepdims=True)

    # Finalize: loss = logsumexp - picked, written as a lane-dense 128-wide slab.
    @pl.when(j == pl.num_programs(1) - 1)
    def _():
        lse = m_scr[...] + jnp.log(l_scr[...])
        loss_col = lse - p_scr[...]                               # (tile_n, 1)
        loss_ref[...] = jnp.broadcast_to(loss_col, loss_ref.shape).astype(loss_ref.dtype)


def xlm_pred_layer(x, y, weight, bias, *,
                   tile_n=512, tile_v=1024,
                   matmul_dtype=jnp.bfloat16,
                   scores_dtype=None,
                   want_scores=True):
    """
    x      : (batch, seq, dim) float32/bfloat16
    y      : (batch, seq)      int labels in [0, n_words)
    weight : (n_words, dim)    (PyTorch nn.Linear convention, NOT transposed)
    bias   : (n_words,)
    returns (loss, scores):
        loss   : (batch*seq,)          float32
        scores : (batch, seq, n_words) scores_dtype (default x.dtype), or None
                 when want_scores=False.
    """
    batch, seq, dim = x.shape
    n_words = weight.shape[0]
    n_tok = batch * seq
    if scores_dtype is None:
        scores_dtype = x.dtype

    # Clamp tiles for small problems (blocks need not divide the arrays; edge
    # blocks are handled by Pallas — we just avoid grossly oversized tiles).
    tile_n = max(8, min(tile_n, _round_up(n_tok, 8)))
    tile_v = max(128, min(tile_v, _round_up(n_words, 128)))
    # v7x megacore: keep >= 2 token tiles so the "parallel" axis spans both TCs.
    if n_tok > 512 and pl.cdiv(n_tok, tile_n) < 2:
        tile_n = _round_up(pl.cdiv(n_tok, 2), 256)

    n_ttiles = pl.cdiv(n_tok, tile_n)
    n_vtiles = pl.cdiv(n_words, tile_v)
    grid = (n_ttiles, n_vtiles)

    x_flat = x.reshape(n_tok, dim)
    y_col = y.reshape(n_tok, 1).astype(jnp.int32)

    # bf16 streaming of the matmul operands (f32 accumulation happens in-kernel).
    if matmul_dtype is not None:
        if x_flat.dtype != matmul_dtype:
            x_flat = x_flat.astype(matmul_dtype)
        w_in = weight if weight.dtype == matmul_dtype else weight.astype(matmul_dtype)
    else:
        w_in = weight

    # Resident bias: tiny pad to a whole number of vocab tiles (padded entries are
    # never selected — the kernel masks / never picks columns >= n_words), then
    # reshape so the kernel simply indexes row j.
    n_words_vpad = n_vtiles * tile_v
    b = bias.astype(jnp.float32)
    if n_words_vpad != n_words:
        b = jnp.pad(b, (0, n_words_vpad - n_words))
    b3 = b.reshape(n_vtiles, 1, tile_v)

    kernel = functools.partial(
        _pred_layer_kernel,
        tile_v=tile_v, n_words=n_words, with_scores=want_scores,
        masked_tail=(n_words % tile_v != 0))

    out_shapes = []
    out_specs = []
    if want_scores:
        out_shapes.append(jax.ShapeDtypeStruct((n_tok, n_words), scores_dtype))
        out_specs.append(pl.BlockSpec((tile_n, tile_v), lambda i, j: (i, j)))
    out_shapes.append(jax.ShapeDtypeStruct((n_tok, 128), jnp.float32))
    out_specs.append(pl.BlockSpec((tile_n, 128), lambda i, j: (i, 0)))

    # VMEM budget derived from the actual (double-buffered) block sizes.
    mm_bytes = jnp.dtype(x_flat.dtype).itemsize
    dim_pad = _round_up(dim, 128)
    est = 0
    est += 2 * tile_n * dim_pad * mm_bytes                 # x tiles
    est += 2 * tile_v * dim_pad * mm_bytes                 # W tiles
    est += 2 * tile_n * 128 * 4                            # y labels (lane-padded)
    est += n_vtiles * tile_v * 4                           # resident bias
    est += 2 * tile_n * 128 * 4                            # loss slab
    if want_scores:
        est += 2 * tile_n * tile_v * jnp.dtype(scores_dtype).itemsize
    est += 3 * tile_n * 128 * 4                            # LSE scratch accumulators
    vmem_limit = int(min(max(3 * est // 2 + (4 << 20), 24 << 20), 56 << 20))

    results = pl.pallas_call(
        kernel,
        out_shape=tuple(out_shapes),
        grid_spec=pltpu.PrefetchScalarGridSpec(
            num_scalar_prefetch=0,
            grid=grid,
            in_specs=[
                pl.BlockSpec((tile_n, 1), lambda i, j: (i, 0)),              # y labels
                pl.BlockSpec((tile_n, dim), lambda i, j: (i, 0)),            # x tokens
                pl.BlockSpec((tile_v, dim), lambda i, j: (j, 0)),            # W (streamed)
                pl.BlockSpec((n_vtiles, 1, tile_v), lambda i, j: (0, 0, 0)),  # bias (resident)
            ],
            out_specs=out_specs,
            scratch_shapes=[
                pltpu.VMEM((tile_n, 1), jnp.float32),   # running max
                pltpu.VMEM((tile_n, 1), jnp.float32),   # running sum of exp
                pltpu.VMEM((tile_n, 1), jnp.float32),   # running picked logit
            ],
        ),
        compiler_params=pltpu.CompilerParams(
            dimension_semantics=("parallel", "arbitrary"),
            vmem_limit_bytes=vmem_limit,
        ),
    )(y_col, x_flat, w_in, b3)

    loss = results[-1][:, 0]
    if not want_scores:
        return loss, None
    scores = results[0].reshape(batch, seq, n_words)
    return loss, scores


def _reference(x, y, weight, bias, matmul_dtype=jnp.bfloat16):
    """Plain-JAX reference of the PyTorch forward (asm=False), mirroring the
    wrapper's bf16 cast of the matmul operands (f32 accumulation)."""
    if matmul_dtype is not None:
        x = x.astype(matmul_dtype).astype(jnp.float32)
        weight = weight.astype(matmul_dtype).astype(jnp.float32)
    scores = jnp.einsum("bsd,vd->bsv", x, weight) + bias
    n_words = weight.shape[0]
    sf = scores.reshape(-1, n_words)
    yf = y.reshape(-1)
    lse = jax.nn.logsumexp(sf, axis=-1)
    picked = jnp.take_along_axis(sf, yf[:, None], axis=-1)[:, 0]
    return lse - picked, scores


if __name__ == "__main__":
    # Config (synthetic, deterministic): asm=False, emb_dim=32, n_words=128
    batch, seq, dim, n_words = 2, 8, 32, 128

    key = jax.random.PRNGKey(0)
    kx, ky, kw, kb = jax.random.split(key, 4)

    x = jax.random.normal(kx, (batch, seq, dim), dtype=jnp.float32)
    y = jax.random.randint(ky, (batch, seq), 0, n_words, dtype=jnp.int32)
    weight = jax.random.normal(kw, (n_words, dim), dtype=jnp.float32) * 0.02
    bias = jax.random.normal(kb, (n_words,), dtype=jnp.float32) * 0.02

    loss, scores = xlm_pred_layer(x, y, weight, bias)
    jax.block_until_ready((loss, scores))

    ref_loss, ref_scores = _reference(x, y, weight, bias)
    assert scores.shape == (batch, seq, n_words)
    assert loss.shape == (batch * seq,)
    assert jnp.allclose(scores, ref_scores, atol=2e-3, rtol=2e-3), "scores mismatch"
    assert jnp.allclose(loss, ref_loss, atol=2e-3, rtol=2e-3), "loss mismatch"

    # Ragged shapes: exercises the in-kernel vocab-tail masking and uneven edge
    # blocks (no wrapper-side padding of W / x), plus the loss-only variant.
    b2, s2, d2, v2 = 2, 5, 32, 200
    ks = jax.random.split(key, 8)
    x2 = jax.random.normal(ks[4], (b2, s2, d2), dtype=jnp.float32)
    y2 = jax.random.randint(ks[5], (b2, s2), 0, v2, dtype=jnp.int32)
    w2 = jax.random.normal(ks[6], (v2, d2), dtype=jnp.float32) * 0.02
    bb2 = jax.random.normal(ks[7], (v2,), dtype=jnp.float32) * 0.02

    loss2, scores2 = xlm_pred_layer(x2, y2, w2, bb2)
    loss2_only, _ = xlm_pred_layer(x2, y2, w2, bb2, want_scores=False)
    jax.block_until_ready((loss2, scores2, loss2_only))

    ref_loss2, ref_scores2 = _reference(x2, y2, w2, bb2)
    assert jnp.allclose(scores2, ref_scores2, atol=2e-3, rtol=2e-3), "ragged scores mismatch"
    assert jnp.allclose(loss2, ref_loss2, atol=2e-3, rtol=2e-3), "ragged loss mismatch"
    assert jnp.allclose(loss2_only, ref_loss2, atol=2e-3, rtol=2e-3), "loss-only mismatch"

    print("KERNEL_OK")
</pallas_src>

<mosaic_0001>
module attributes {stable_mosaic.version = 11 : i64} {
  func.func @_pred_layer_kernel(%arg0: i32, %arg1: i32, %arg2: memref<16x1xi32, #tpu.memory_space<vmem>>, %arg3: memref<16x32xbf16, #tpu.memory_space<vmem>>, %arg4: memref<128x32xbf16, #tpu.memory_space<vmem>>, %arg5: memref<1x1x128xf32, #tpu.memory_space<vmem>>, %arg6: memref<16x128xf32, #tpu.memory_space<vmem>>, %arg7: memref<16x128xf32, #tpu.memory_space<vmem>>, %arg8: memref<16x1xf32, #tpu.memory_space<vmem>>, %arg9: memref<16x1xf32, #tpu.memory_space<vmem>>, %arg10: memref<16x1xf32, #tpu.memory_space<vmem>>) attributes {dimension_semantics = [#tpu.dimension_semantics<parallel>, #tpu.dimension_semantics<arbitrary>], iteration_bounds = array<i64: 1, 1>, scalar_prefetch = 0 : i64, scratch_operands = 3 : i64, tpu.core_type = #tpu.core_type<tc>, window_params = [{transform_indices = @transform_0, window_bounds = array<i64: 16, 1>}, {transform_indices = @transform_1, window_bounds = array<i64: 16, 32>}, {transform_indices = @transform_2, window_bounds = array<i64: 128, 32>}, {pipeline_mode = #tpu.pipeline_mode<synchronous>, transform_indices = @transform_3, window_bounds = array<i64: 1, 1, 128>}, {transform_indices = @transform_4, window_bounds = array<i64: 16, 128>}, {transform_indices = @transform_5, window_bounds = array<i64: 16, 128>}]} {
    %c0_i32 = arith.constant 0 : i32
    %0 = arith.cmpi eq, %arg1, %c0_i32 : i32
    %1 = arith.extui %0 : i1 to i32
    %c0_i32_0 = arith.constant 0 : i32
    %2 = arith.cmpi ne, %1, %c0_i32_0 : i32
    scf.if %2 {
      %cst_28 = arith.constant 0xFF800000 : f32
      %45 = vector.broadcast %cst_28 : f32 to vector<16x1xf32>
      %c0_29 = arith.constant 0 : index
      %c0_30 = arith.constant 0 : index
      %46 = vector.load %arg8[%c0_29, %c0_30] : memref<16x1xf32, #tpu.memory_space<vmem>>, vector<16x1xf32>
      tpu.vector_store %arg8[%c0_29, %c0_30], %45 {strides = array<i32>} : memref<16x1xf32, #tpu.memory_space<vmem>>, vector<16x1xf32>,
      %cst_31 = arith.constant 0.000000e+00 : f32
      %47 = vector.broadcast %cst_31 : f32 to vector<16x1xf32>
      %c0_32 = arith.constant 0 : index
      %c0_33 = arith.constant 0 : index
      %48 = vector.load %arg9[%c0_32, %c0_33] : memref<16x1xf32, #tpu.memory_space<vmem>>, vector<16x1xf32>
      tpu.vector_store %arg9[%c0_32, %c0_33], %47 {strides = array<i32>} : memref<16x1xf32, #tpu.memory_space<vmem>>, vector<16x1xf32>,
      %cst_34 = arith.constant 0.000000e+00 : f32
      %49 = vector.broadcast %cst_34 : f32 to vector<16x1xf32>
      %c0_35 = arith.constant 0 : index
      %c0_36 = arith.constant 0 : index
      %50 = vector.load %arg10[%c0_35, %c0_36] : memref<16x1xf32, #tpu.memory_space<vmem>>, vector<16x1xf32>
      tpu.vector_store %arg10[%c0_35, %c0_36], %49 {strides = array<i32>} : memref<16x1xf32, #tpu.memory_space<vmem>>, vector<16x1xf32>,
    } else {
    }
    %c0 = arith.constant 0 : index
    %c0_1 = arith.constant 0 : index
    %3 = vector.load %arg3[%c0, %c0_1] : memref<16x32xbf16, #tpu.memory_space<vmem>>, vector<16x32xbf16>
    %c0_2 = arith.constant 0 : index
    %c0_3 = arith.constant 0 : index
    %4 = vector.load %arg4[%c0_2, %c0_3] : memref<128x32xbf16, #tpu.memory_space<vmem>>, vector<128x32xbf16>
    %cst = arith.constant dense<0.000000e+00> : vector<16x128xf32>
    %5 = tpu.matmul %3, %4, %cst {dimension_numbers = #tpu.dot_dimension_numbers<[1], [1], [0], [0], [0, 0, 1, 0], [], []>} : vector<16x32xbf16>, vector<128x32xbf16>, vector<16x128xf32> -> vector<16x128xf32>
    %6 = arith.index_cast %arg1 : i32 to index
    %c0_4 = arith.constant 0 : index
    %c0_5 = arith.constant 0 : index
    %7 = vector.load %arg5[%6, %c0_4, %c0_5] : memref<1x1x128xf32, #tpu.memory_space<vmem>>, vector<1x1x128xf32>
    %8 = vector.shape_cast %7 : vector<1x1x128xf32> to vector<1x128xf32>
    %9 = vector.broadcast %8 : vector<1x128xf32> to vector<16x128xf32>
    %10 = arith.addf %5, %9 : vector<16x128xf32>
    %11 = tpu.iota {dimensions = array<i32: 1>} : vector<16x128xi32>
    %c128_i32 = arith.constant 128 : i32
    %12 = arith.muli %arg1, %c128_i32 : i32
    %13 = vector.broadcast %12 : i32 to vector<16x128xi32>
    %14 = arith.addi %11, %13 : vector<16x128xi32>
    %c0_6 = arith.constant 0 : index
    %c0_7 = arith.constant 0 : index
    %15 = vector.load %arg6[%c0_6, %c0_7] : memref<16x128xf32, #tpu.memory_space<vmem>>, vector<16x128xf32>
    tpu.vector_store %arg6[%c0_6, %c0_7], %10 {strides = array<i32>} : memref<16x128xf32, #tpu.memory_space<vmem>>, vector<16x128xf32>,
    %c0_8 = arith.constant 0 : index
    %c0_9 = arith.constant 0 : index
    %16 = vector.load %arg8[%c0_8, %c0_9] : memref<16x1xf32, #tpu.memory_space<vmem>>, vector<16x1xf32>
    %cst_10 = arith.constant dense<0xFF800000> : vector<16xf32>
    %17 = vector.multi_reduction <maximumf>, %10, %cst_10 [1] : vector<16x128xf32> to vector<16xf32>
    %18 = vector.shape_cast %17 : vector<16xf32> to vector<16x1xf32>
    %19 = arith.maximumf %16, %18 : vector<16x1xf32>
    %20 = arith.subf %16, %19 : vector<16x1xf32>
    %21 = math.exp %20 : vector<16x1xf32>
    %c0_11 = arith.constant 0 : index
    %c0_12 = arith.constant 0 : index
    %22 = vector.load %arg9[%c0_11, %c0_12] : memref<16x1xf32, #tpu.memory_space<vmem>>, vector<16x1xf32>
    %23 = arith.mulf %21, %22 : vector<16x1xf32>
    %24 = vector.broadcast %19 : vector<16x1xf32> to vector<16x128xf32>
    %25 = arith.subf %10, %24 : vector<16x128xf32>
    %26 = math.exp %25 : vector<16x128xf32>
    %cst_13 = arith.constant dense<0.000000e+00> : vector<16xf32>
    %27 = vector.multi_reduction <add>, %26, %cst_13 [1] : vector<16x128xf32> to vector<16xf32>
    %28 = vector.shape_cast %27 : vector<16xf32> to vector<16x1xf32>
    %29 = arith.addf %23, %28 : vector<16x1xf32>
    %c0_14 = arith.constant 0 : index
    %c0_15 = arith.constant 0 : index
    %30 = vector.load %arg9[%c0_14, %c0_15] : memref<16x1xf32, #tpu.memory_space<vmem>>, vector<16x1xf32>
    tpu.vector_store %arg9[%c0_14, %c0_15], %29 {strides = array<i32>} : memref<16x1xf32, #tpu.memory_space<vmem>>, vector<16x1xf32>,
    %c0_16 = arith.constant 0 : index
    %c0_17 = arith.constant 0 : index
    %31 = vector.load %arg8[%c0_16, %c0_17] : memref<16x1xf32, #tpu.memory_space<vmem>>, vector<16x1xf32>
    tpu.vector_store %arg8[%c0_16, %c0_17], %19 {strides = array<i32>} : memref<16x1xf32, #tpu.memory_space<vmem>>, vector<16x1xf32>,
    %c0_18 = arith.constant 0 : index
    %c0_19 = arith.constant 0 : index
    %32 = vector.load %arg2[%c0_18, %c0_19] : memref<16x1xi32, #tpu.memory_space<vmem>>, vector<16x1xi32>
    %c0_20 = arith.constant 0 : index
    %c0_21 = arith.constant 0 : index
    %33 = vector.load %arg10[%c0_20, %c0_21] : memref<16x1xf32, #tpu.memory_space<vmem>>, vector<16x1xf32>
    %34 = vector.broadcast %32 : vector<16x1xi32> to vector<16x128xi32>
    %35 = arith.cmpi eq, %14, %34 : vector<16x128xi32>
    %cst_22 = arith.constant 0.000000e+00 : f32
    %36 = vector.broadcast %cst_22 : f32 to vector<16x128xf32>
    %37 = arith.select %35, %10, %36 : vector<16x128xi1>, vector<16x128xf32>
    %cst_23 = arith.constant dense<0.000000e+00> : vector<16xf32>
    %38 = vector.multi_reduction <add>, %37, %cst_23 [1] : vector<16x128xf32> to vector<16xf32>
    %39 = vector.shape_cast %38 : vector<16xf32> to vector<16x1xf32>
    %40 = arith.addf %33, %39 : vector<16x1xf32>
    %c0_24 = arith.constant 0 : index
    %c0_25 = arith.constant 0 : index
    %41 = vector.load %arg10[%c0_24, %c0_25] : memref<16x1xf32, #tpu.memory_space<vmem>>, vector<16x1xf32>
    tpu.vector_store %arg10[%c0_24, %c0_25], %40 {strides = array<i32>} : memref<16x1xf32, #tpu.memory_space<vmem>>, vector<16x1xf32>,
    %c0_i32_26 = arith.constant 0 : i32
    %42 = arith.cmpi eq, %arg1, %c0_i32_26 : i32
    %43 = arith.extui %42 : i1 to i32
    %c0_i32_27 = arith.constant 0 : i32
    %44 = arith.cmpi ne, %43, %c0_i32_27 : i32
    scf.if %44 {
      %c0_28 = arith.constant 0 : index
      %c0_29 = arith.constant 0 : index
      %45 = vector.load %arg8[%c0_28, %c0_29] : memref<16x1xf32, #tpu.memory_space<vmem>>, vector<16x1xf32>
      %c0_30 = arith.constant 0 : index
      %c0_31 = arith.constant 0 : index
      %46 = vector.load %arg9[%c0_30, %c0_31] : memref<16x1xf32, #tpu.memory_space<vmem>>, vector<16x1xf32>
      %47 = math.log %46 : vector<16x1xf32>
      %48 = arith.addf %45, %47 : vector<16x1xf32>
      %c0_32 = arith.constant 0 : index
      %c0_33 = arith.constant 0 : index
      %49 = vector.load %arg10[%c0_32, %c0_33] : memref<16x1xf32, #tpu.memory_space<vmem>>, vector<16x1xf32>
      %50 = arith.subf %48, %49 : vector<16x1xf32>
      %51 = vector.shape_cast %50 : vector<16x1xf32> to vector<16x1xf32>
      %52 = vector.broadcast %51 : vector<16x1xf32> to vector<16x128xf32>
      %c0_34 = arith.constant 0 : index
      %c0_35 = arith.constant 0 : index
      %53 = vector.load %arg7[%c0_34, %c0_35] : memref<16x128xf32, #tpu.memory_space<vmem>>, vector<16x128xf32>
      tpu.vector_store %arg7[%c0_34, %c0_35], %52 {strides = array<i32>} : memref<16x128xf32, #tpu.memory_space<vmem>>, vector<16x128xf32>,
    } else {
    }
    return
  }
  func.func @transform_0(%arg0: i32, %arg1: i32) -> (i32, i32) {
    %c0_i32 = arith.constant 0 : i32
    %c0_i32_0 = arith.constant 0 : i32
    return %arg0, %c0_i32 : i32, i32
  }
  func.func @transform_1(%arg0: i32, %arg1: i32) -> (i32, i32) {
    %c0_i32 = arith.constant 0 : i32
    %c0_i32_0 = arith.constant 0 : i32
    return %arg0, %c0_i32 : i32, i32
  }
  func.func @transform_2(%arg0: i32, %arg1: i32) -> (i32, i32) {
    %c0_i32 = arith.constant 0 : i32
    %c0_i32_0 = arith.constant 0 : i32
    return %arg1, %c0_i32 : i32, i32
  }
  func.func @transform_3(%arg0: i32, %arg1: i32) -> (i32, i32, i32) {
    %c0_i32 = arith.constant 0 : i32
    %c0_i32_0 = arith.constant 0 : i32
    %c0_i32_1 = arith.constant 0 : i32
    %c0_i32_2 = arith.constant 0 : i32
    return %c0_i32, %c0_i32_0, %c0_i32_1 : i32, i32, i32
  }
  func.func @transform_4(%arg0: i32, %arg1: i32) -> (i32, i32) {
    %c0_i32 = arith.constant 0 : i32
    return %arg0, %arg1 : i32, i32
  }
  func.func @transform_5(%arg0: i32, %arg1: i32) -> (i32, i32) {
    %c0_i32 = arith.constant 0 : i32
    %c0_i32_0 = arith.constant 0 : i32
    return %arg0, %c0_i32 : i32, i32
  }
}

</mosaic_0001>

<bundles_post_ra>
// kernel: tpu_custom_call.1
= control target key start
LH: loop header
LB: loop body
LE: loop exit
PB: predicated region body
PF: predicated region fallthrough
CT: control target
= control target key end

     0   :  { %11 = vsyncpa [#allocation6], 0  ;;  %v426_v1 = vmov 0.0   ;;  %vm103_vm0 = vcmask 261120   ;;  %vm427_vm1 = vmmov 0   ;;  %s545_s0 = inlined_call_operand.vmem [shape: s32[16,1], index: 0, kind: input, shape index: {}]   ;;  %s546_s1 = inlined_call_operand.vmem [shape: bf16[16,32], index: 1, kind: input, shape index: {}]   ;;  %s547_s2 = inlined_call_operand.vmem [shape: bf16[128,32], index: 2, kind: input, shape index: {}]   ;;  %s548_s3 = inlined_call_operand.vmem [shape: f32[1,1,128], index: 3, kind: input, shape index: {}]   ;;  %s549_s4 = inlined_call_operand.hbm [shape: f32[16,128], index: 4, kind: output, shape index: {0}]   ;;  %s550_s5 = inlined_call_operand.hbm [shape: f32[16,128], index: 5, kind: output, shape index: {1}]  }
   0x1   :  { %v357_v0 = vld [vmem:[%s547_s2] sm:$0xff]   ;;  %327 = vmatprep.subr.bf16.mxu0 %v426_v1  ;;  %v358_v3 = vld [vmem:[%s547_s2 + $0x8] sm:$0xff]   ;;  %343 = vmatprep.mubr.msk.bf16.mxu0 %vm427_vm1, %v426_v1 }
   0x2   :  { %v108_v2 = vsel %vm103_vm0, %v357_v0, 0  ;;  %v111_v4 = vsel %vm103_vm0, %v358_v3, 0 }
   0x3   :  { %328 = vmatpush3.bf16.xpose.msra.mxu0 %v108_v2 }
   0x4   :  { %329 = vmatprep.subr.bf16.mxu0 %v426_v1 }
   0x5   :  { %12 = vsyncpa [#allocation8], 0  ;;  %v359_v5 = vld [vmem:[%s547_s2 + $0x10] sm:$0xff]   ;;  %v360_v7 = vld [vmem:[%s547_s2 + $0x18] sm:$0xff]   ;;  %v428_v18 = vmov 0   ;;  %vm26_vm2 = vcmask 7168   ;;  %v172_v35 = vlaneseq }
   0x6   :  { %v114_v6 = vsel %vm103_vm0, %v359_v5, 0  ;;  %v117_v8 = vsel %vm103_vm0, %v360_v7, 0  ;;  %v361_v9 = vld [vmem:[%s547_s2 + $0x20] sm:$0xff]   ;;  %v362_v11 = vld [vmem:[%s547_s2 + $0x28] sm:$0xff]   ;;  %v363_v13 = vld [vmem:[%s547_s2 + $0x30] sm:$0xff]   ;;  %356 = vset.pattern.permute.xlu0 %v428_v18  ;;  %355 = vset.pattern.permute.xlu1 %v428_v18  ;;  %v429_v26 = vmov -inf  }
   0x7   :  { %v120_v10 = vsel %vm103_vm0, %v361_v9, 0  ;;  %v123_v12 = vsel %vm103_vm0, %v362_v11, 0  ;;  %v126_v14 = vsel %vm103_vm0, %v363_v13, 0  ;;  %v364_v15 = vld [vmem:[%s547_s2 + $0x38] sm:$0xff]   ;;  %v365_v17 = vld [vmem:[%s546_s1] sm:$0xff]   ;;  %27 = vst.msk [vmem:[#allocation2] sm:$0xff] %vm26_vm2, %v429_v26 }
   0x8   :  { %v129_v16 = vsel %vm103_vm0, %v364_v15, 0  ;;  %v307_v19 = vld [vmem:[%s548_s3] ss:$0 sm:$0xff]  ;;  %28 = vst.msk [vmem:[#allocation2 + $0x8] sm:$0xff] %vm26_vm2, %v429_v26  ;;  %29 = vst.msk [vmem:[#allocation3] sm:$0xff] %vm26_vm2, %v426_v1  ;;  %v225_v37 = vld [vmem:[%s545_s0 + $0x8] sm:$0xff] }
   0x9   :  { %30 = vst.msk [vmem:[#allocation3 + $0x8] sm:$0xff] %vm26_vm2, %v426_v1  ;;  %31 = vst.msk [vmem:[#allocation4] sm:$0xff] %vm26_vm2, %v426_v1  ;;  %v224_v27 = vld [vmem:[%s545_s0] sm:$0xff]  ;;  %v173_v38 = vand.u32 127, %v172_v35  ;;  %s430_s0 = smov [#allocation5]  }
   0xa   :  { %32 = vst.msk [vmem:[#allocation4 + $0x8] sm:$0xff] %vm26_vm2, %v426_v1  ;;  %s280_s14 = sshll.u32 %s430_s0, 4  ;;  %s281_s14 = int_to_ptr.vmem [resolvable:$true] %s280_s14 }
   0xb   :  { %330 = vmatpush3.bf16.xpose.msra.mxu0 %v111_v4  ;;  %s378_s15 = scalar_lea.vmem %s281_s14, 256  ;;  %p383_p1 = scmp.lt.s32.totalorder %s281_s14, %s281_s14 }
   0xc   :  { %331 = vmatprep.subr.bf16.mxu0 %v426_v1  ;;  %p379_p0 = scmp.ne.s32.totalorder %s281_s14, %s378_s15  ;;  %p384_p2 = scmp.lt.s32.totalorder %s378_s15, %s378_s15 }
   0xe   :  { %v179_v28 = vld [vmem:[#allocation2] sm:$0xff]  ;;  %p385_p3 = por %p384_p2, %p383_p1 }
   0xf   :  { %v180_v31 = vld [vmem:[#allocation2 + $0x8] sm:$0xff]  ;;  %v193_v57 = vld [vmem:[#allocation3] sm:$0xff] }
  0x10   :  { %v226_v51 = vld [vmem:[#allocation4] sm:$0xff]  ;;  %v194_v61 = vld [vmem:[#allocation3 + $0x8] sm:$0xff]  ;;  %p386_p4 = pnand %p385_p3, %p379_p0 }
  0x11   :  { %v227_v2 = vld [vmem:[#allocation4 + $0x8] sm:$0xff] }
  0x13   :  { %332 = vmatpush3.bf16.xpose.msra.mxu0 %v114_v6 }
  0x14   :  { %333 = vmatprep.subr.bf16.mxu0 %v426_v1 }
  0x1b   :  { %334 = vmatpush3.bf16.xpose.msra.mxu0 %v117_v8 }
  0x1c   :  { %335 = vmatprep.subr.bf16.mxu0 %v426_v1 }
  0x23   :  { %336 = vmatpush3.bf16.xpose.msra.mxu0 %v120_v10 }
  0x24   :  { %337 = vmatprep.subr.bf16.mxu0 %v426_v1 }
  0x2b   :  { %338 = vmatpush3.bf16.xpose.msra.mxu0 %v123_v12 }
  0x2c   :  { %339 = vmatprep.subr.bf16.mxu0 %v426_v1 }
  0x33   :  { %340 = vmatpush3.bf16.xpose.msra.mxu0 %v126_v14 }
  0x34   :  { %341 = vmatprep.subr.bf16.mxu0 %v426_v1 }
  0x3b   :  { %342 = vmatpush3.bf16.xpose.msra.mxu0 %v129_v16 }
  0x42   :  { %344 = vmatmul.mubr.msk.bf16.vlgmr.msra.gmra.mrb[0].mxu0 %vm103_vm0, %v365_v17 }
 0x115   :  { %v165_v20 = vpop.f32.mrb[0].mxu0 }
 0x116   :  { %v166_v21 = vadd.f32 %v307_v19, %v165_v20  ;;  %v345_v22 = vpop.f32.mrb[1].mxu0 }
 0x117   :  { %v168_v23 = vpop.f32.mrb[2].mxu0 }
 0x118   :  { %177 = vst [vmem:[#allocation5] sm:$0xff] %v166_v21  ;;  %v169_v24 = vadd.f32 %v307_v19, %v168_v23  ;;  %181 = vmax.xlane.f32.xlu0 %v166_v21  ;;  %v346_v25 = vpop.f32.mrb[3].mxu0 }
 0x11a   :  { %178 = vst [vmem:[#allocation5 + $0x8] sm:$0xff] %v169_v24 }
 0x11c   :  { %183 = vmax.xlane.f32.xlu0 %v169_v24 }
 0x132   :  { %229 = vperm.xlu0 %356, %v224_v27  }
 0x1a5   :  { %v182_v29 = vpop.xlane.xlu0 %181 }
 0x1a6   :  { %v185_v30 = vmax.f32 %v179_v28, %v182_v29 }
 0x1a8   :  { %v187_v32 = vsub.f32 %v179_v28, %v185_v30  ;;  %222 = vst.msk [vmem:[#allocation2] sm:$0xff] %vm26_vm2, %v185_v30  ;;  %199 = vperm.xlu1 %355, %v185_v30  }
 0x1a9   :  { %v184_v33 = vpop.xlane.xlu0 %183 }
 0x1aa   :  { %v186_v34 = vmax.f32 %v180_v31, %v184_v33  ;;  %v189_v54 = vmul.f32 1.442695, %v187_v32 }
 0x1ac   :  { %v188_v36 = vsub.f32 %v180_v31, %v186_v34  ;;  %223 = vst.msk [vmem:[#allocation2 + $0x8] sm:$0xff] %vm26_vm2, %v186_v34  ;;  %204 = vperm.xlu1 %355, %v186_v34  }
 0x1ae   :  { %v191_v55 = vmul.f32 1.442695, %v188_v36 }
 0x1af   :  { %v249_v9 = vld [vmem:[#allocation2] sm:$0xff] }
 0x1b0   :  { %232 = vperm.xlu1 %355, %v225_v37  }
 0x1b1   :  { %v230_v39 = vpop.permute.xlu0 %229 }
 0x1b2   :  { %vm234_vm3 = vcmp.eq.s32.totalorder %v173_v38, %v230_v39 }
 0x1b3   :  { %v236_v40 = vsel %vm234_vm3, %v166_v21, 0.0  ;;  %v250_v15 = vld [vmem:[#allocation2 + $0x8] sm:$0xff] }
 0x1b4   :  { %238 = vadd.xlane.f32.xlu0 %v236_v40 }
 0x227   :  { %v200_v41 = vpop.permute.xlu1 %199 }
 0x228   :  { %v207_v42 = vsub.f32 %v166_v21, %v200_v41 }
 0x22a   :  { %v209_v43 = vmul.f32 1.442695, %v207_v42 }
 0x22b   :  { %v205_v44 = vpop.permute.xlu1 %204 }
 0x22c   :  { %366 = vpow2.f32 %v209_v43  ;;  %v208_v45 = vsub.f32 %v169_v24, %v205_v44 }
 0x22e   :  { %v211_v46 = vmul.f32 1.442695, %v208_v45 }
 0x22f   :  { %v233_v48 = vpop.permute.xlu1 %232 }
 0x230   :  { %368 = vpow2.f32 %v211_v46  ;;  %vm235_vm4 = vcmp.eq.s32.totalorder %v173_v38, %v233_v48 }
 0x231   :  { %v237_v50 = vsel %vm235_vm4, %v169_v24, 0.0  ;;  %370 = vpow2.f32 %v189_v54 }
 0x232   :  { %372 = vpow2.f32 %v191_v55 }
 0x236   :  { %v367_v47 = vpop.eup %366 }
 0x237   :  { %213 = vadd.xlane.f32.xlu1 %v367_v47 }
 0x23a   :  { %v369_v49 = vpop.eup %368 }
 0x23b   :  { %215 = vadd.xlane.f32.xlu1 %v369_v49  ;;  %v371_v56 = vpop.eup %370 }
 0x23c   :  { %v195_v58 = vmul.f32 %v371_v56, %v193_v57  ;;  %v373_v59 = vpop.eup %372 }
 0x23d   :  { %v196_v63 = vmul.f32 %v373_v59, %v194_v61 }
 0x23f   :  { %240 = vadd.xlane.f32.xlu1 %v237_v50 }
 0x241   :  { %v239_v52 = vpop.xlane.xlu0 %238 }
 0x242   :  { %v242_v53 = vadd.f32 %v239_v52, %v226_v51 }
 0x244   :  { %244 = vst.msk [vmem:[#allocation4] sm:$0xff] %vm26_vm2, %v242_v53 }
 0x24b   :  { %v259_v12 = vld [vmem:[#allocation4] sm:$0xff] }
 0x2c4   :  { %v214_v60 = vpop.xlane.xlu1 %213 }
 0x2c5   :  { %v217_v62 = vadd.f32 %v214_v60, %v195_v58 }
 0x2c7   :  { %220 = vst.msk [vmem:[#allocation3] sm:$0xff] %vm26_vm2, %v217_v62 }
 0x2c8   :  { %v216_v0 = vpop.xlane.xlu1 %215 }
 0x2c9   :  { %v218_v1 = vadd.f32 %v216_v0, %v196_v63 }
 0x2cb   :  { %221 = vst.msk [vmem:[#allocation3 + $0x8] sm:$0xff] %vm26_vm2, %v218_v1 }
 0x2cc   :  { %v241_v3 = vpop.xlane.xlu1 %240 }
 0x2cd   :  { %v243_v4 = vadd.f32 %v241_v3, %v227_v2 }
 0x2ce   :  { %v251_v5 = vld [vmem:[#allocation3] sm:$0xff] }
 0x2cf   :  { %245 = vst.msk [vmem:[#allocation4 + $0x8] sm:$0xff] %vm26_vm2, %v243_v4  ;;  %374 = vlog2.f32 %v251_v5 }
 0x2d2   :  { %v252_v6 = vld [vmem:[#allocation3 + $0x8] sm:$0xff] }
 0x2d3   :  { %376 = vlog2.f32 %v252_v6 }
 0x2d6   :  { %v260_v17 = vld [vmem:[#allocation4 + $0x8] sm:$0xff] }
 0x2d9   :  { %v375_v7 = vpop.eup %374 }
 0x2da   :  { %v254_v8 = vmul.f32 0.6931472, %v375_v7 }
 0x2dc   :  { %v257_v10 = vadd.f32 %v254_v8, %v249_v9 }
 0x2dd   :  { %v377_v11 = vpop.eup %376 }
 0x2de   :  { %v261_v13 = vsub.f32 %v257_v10, %v259_v12  ;;  %v256_v14 = vmul.f32 0.6931472, %v377_v11 }
 0x2e0   :  { %265 = vperm.xlu1 %355, %v261_v13   ;;  %v258_v16 = vadd.f32 %v256_v14, %v250_v15 }
 0x2e2   :  { %v262_v18 = vsub.f32 %v258_v16, %v260_v17 }
 0x2e4   :  { %270 = vperm.xlu1 %355, %v262_v18  }
 0x2e5   :  { %389 = shalt.err (!%p386_p4)
}
 0x2e6   :  { %s390_s18 = scalar_lea.hbm %s549_s4, 256 }
 0x2e7   :  { %p391_p5 = scmp.ne.s32.totalorder %s549_s4, %s390_s18  ;;  %p394_p6 = scmp.lt.u32.totalorder %s390_s18, %s549_s4 }
 0x2e9   :  { %p396_p7 = pnand %p394_p6, %p391_p5 }
 0x2eb   :  { %399 = shalt.err (!%p396_p7)
}
 0x2ec   :  { %s431_s23 = smov 128   ;;  %s432_s24 = smov 8  }
 0x2ed   :  { %286 = dma.vmem_to_hbm [thread:$0]  %s281_s14, 256, %s549_s4, [#allocation6], %s431_s23, %s431_s23, %s432_s24  }
 0x2ee   :  { %s433_s27 = smov [#allocation7]  }
 0x2ef   :  { %s292_s28 = sshll.u32 %s433_s27, 4  ;;  %s293_s28 = int_to_ptr.vmem [resolvable:$true] %s292_s28 }
 0x2f0   :  { %s400_s29 = scalar_lea.vmem %s293_s28, 256  ;;  %p405_p9 = scmp.lt.s32.totalorder %s293_s28, %s293_s28 }
 0x2f1   :  { %p401_p8 = scmp.ne.s32.totalorder %s293_s28, %s400_s29  ;;  %p406_p10 = scmp.lt.s32.totalorder %s400_s29, %s400_s29 }
 0x2f3   :  { %p407_p11 = por %p406_p10, %p405_p9 }
 0x2f5   :  { %p408_p12 = pnand %p407_p11, %p401_p8 }
 0x35f   :  { %v266_v19 = vpop.permute.xlu1 %265 }
 0x360   :  { %273 = vst [vmem:[#allocation7] sm:$0xff] %v266_v19 }
 0x363   :  { %v271_v20 = vpop.permute.xlu1 %270 }
 0x364   :  { %274 = vst [vmem:[#allocation7 + $0x8] sm:$0xff] %v271_v20 }
 0x365   :  { %411 = shalt.err (!%p408_p12)
}
 0x366   :  { %s412_s7 = scalar_lea.hbm %s550_s5, 256 }
 0x367   :  { %p413_p13 = scmp.ne.s32.totalorder %s550_s5, %s412_s7  ;;  %p416_p0 = scmp.lt.u32.totalorder %s412_s7, %s550_s5 }
 0x369   :  { %p418_p1 = pnand %p416_p0, %p413_p13 }
 0x36b   :  { %421 = shalt.err (!%p418_p1)
}
 0x36c   :  { %298 = dma.vmem_to_hbm [thread:$0]  %s293_s28, 256, %s550_s5, [#allocation8], %s431_s23, %s431_s23, %s432_s24  }
 0x36d   :  { %422 = dma.done.wait [#allocation6], 256  }
 0x36e   :  { %423 = vsyncadd [#allocation6], 4294967040 }
 0x36f   :  { %424 = dma.done.wait [#allocation8], 256  }
 0x370   :  { %425 = vsyncadd [#allocation8], 4294967040 }
 0x371   :  { %305 = vsyncpa [#allocation6], 1 }
 0x372   :  { %306 = vsyncpa [#allocation8], 1 }

</bundles_post_ra>
